<compile_context>
chip_gen: v7x
topology: tpu7x:2x2x1
jax: 0.10.0
libtpu: 0.0.40
codegen_flags: <defaults>
</compile_context>

<pallas_src>
import functools

import jax
import jax.numpy as jnp
from jax import lax
from jax.experimental import pallas as pl
from jax.experimental.pallas import tpu as pltpu


# --------------------------------------------------------------------------- #
# Kernel
# --------------------------------------------------------------------------- #
def double_conv_kernel(x_ref, w1_ref, b1_ref, w2_ref, b2_ref, out_ref, *,
                       h_img, w_img, row_chunk):
    """One (batch, row-tile) step of the fused double 3x3 convolution.

    x_ref : (1, TH+4, W8+2, Cin)   pre-stitched haloed input window
    w1_ref: (3, 3*Cin,  Cmid)      dx-folded HWIO weights
    w2_ref: (3, 3*Cmid, Cout)
    b1_ref: (1, Cmid) f32 ; b2_ref: (1, Cout) f32
    out_ref: (1, TH, W8, Cout)
    """
    TH = x_ref.shape[1] - 4
    W8 = x_ref.shape[2] - 2
    k1 = w1_ref.shape[1]            # 3*Cin
    cmid = w1_ref.shape[2]
    k2 = w2_ref.shape[1]            # 3*Cmid
    cout = w2_ref.shape[2]
    rows1 = TH + 2                  # mid rows cover image rows [t*TH-1, t*TH+TH+1)
    t = pl.program_id(1)
    cdt = w1_ref.dtype

    xt = x_ref[0]                                           # (TH+4, W8+2, Cin)
    # Fold the 3 horizontal taps into the contraction dim (K = 3*Cin):
    # 3 MXU dots per conv instead of 9.
    xcat = jnp.concatenate(
        [xt[:, 0:W8], xt[:, 1:W8 + 1], xt[:, 2:W8 + 2]], axis=-1)  # (TH+4, W8, 3*Cin)

    w1t = [w1_ref[dy] for dy in range(3)]
    w2t = [w2_ref[dy] for dy in range(3)]
    b1 = b1_ref[...]
    b2 = b2_ref[...]

    # ---- conv1 (row-chunked: bounds the live f32 accumulator footprint) ----
    mid_chunks = []
    for r0 in range(0, rows1, row_chunk):
        r1 = min(r0 + row_chunk, rows1)
        n = r1 - r0
        acc = jnp.dot(xcat[r0 + 0:r1 + 0].reshape(n * W8, k1), w1t[0],
                      preferred_element_type=jnp.float32)
        acc = acc + jnp.dot(xcat[r0 + 1:r1 + 1].reshape(n * W8, k1), w1t[1],
                            preferred_element_type=jnp.float32)
        acc = acc + jnp.dot(xcat[r0 + 2:r1 + 2].reshape(n * W8, k1), w1t[2],
                            preferred_element_type=jnp.float32)
        acc = (acc + b1).reshape(n, W8, cmid)
        # conv2's zero padding: mid rows/cols outside the image must be zero
        # (conv1 over the zero halo yields the bias, not zero).
        rg = t * TH - 1 + r0 + lax.broadcasted_iota(jnp.int32, (n, W8, cmid), 0)
        valid = (rg >= 0) & (rg < h_img)
        if W8 > w_img:
            cg = lax.broadcasted_iota(jnp.int32, (n, W8, cmid), 1)
            valid = valid & (cg < w_img)
        mid_chunks.append(jnp.where(valid, acc, 0.0).astype(cdt))
    mid = mid_chunks[0] if len(mid_chunks) == 1 else jnp.concatenate(mid_chunks, axis=0)

    # ---- conv2: dx-fold with explicit zero column halos (no scratch ref) ----
    zc = jnp.zeros((rows1, 1, cmid), cdt)
    mcat = jnp.concatenate(
        [jnp.concatenate([zc, mid[:, :W8 - 1]], axis=1),   # dx = 0 (reads col-1)
         mid,                                              # dx = 1
         jnp.concatenate([mid[:, 1:], zc], axis=1)],       # dx = 2 (reads col+1)
        axis=-1)                                           # (TH+2, W8, 3*Cmid)

    for r0 in range(0, TH, row_chunk):
        r1 = min(r0 + row_chunk, TH)
        n = r1 - r0
        acc = jnp.dot(mcat[r0 + 0:r1 + 0].reshape(n * W8, k2), w2t[0],
                      preferred_element_type=jnp.float32)
        acc = acc + jnp.dot(mcat[r0 + 1:r1 + 1].reshape(n * W8, k2), w2t[1],
                            preferred_element_type=jnp.float32)
        acc = acc + jnp.dot(mcat[r0 + 2:r1 + 2].reshape(n * W8, k2), w2t[2],
                            preferred_element_type=jnp.float32)
        acc = acc + b2
        out_ref[0, r0:r1] = acc.reshape(n, W8, cout).astype(out_ref.dtype)


# --------------------------------------------------------------------------- #
# Tile sizing / wrapper
# --------------------------------------------------------------------------- #
def _default_vmem_params():
    """Generation-aware (budget, scoped-vmem-limit, max row tile)."""
    try:
        cap = int(pltpu.get_tpu_info().vmem_capacity_bytes)
    except Exception:
        cap = 64 * 1024 * 1024                     # conservative (v7x-sized)
    vmem_limit = min(96 * 1024 * 1024, (cap * 3) // 4)
    budget = min(28 * 1024 * 1024, vmem_limit // 3)
    max_tile_h = 256 if cap >= 96 * 1024 * 1024 else 128
    return budget, vmem_limit, max_tile_h


def _pick_tile_h(H, W8, cin, cmid, cout, *, in_bytes, out_bytes,
                 row_chunk, budget_bytes, max_tile_h):
    """Largest row tile (multiple of 8) whose per-step working set fits budget."""
    lanes = lambda c: -(-c // 128) * 128
    subl = lambda s: -(-s // 8) * 8
    f4 = 4

    def working_set(th):
        rows1 = th + 2
        xin = 2 * subl(th + 4) * subl(W8 + 2) * lanes(cin) * in_bytes   # 2-buffered in
        xcat = subl(th + 4) * W8 * lanes(3 * cin) * in_bytes            # folded conv1 LHS
        a1 = subl(min(row_chunk, rows1) * W8) * lanes(cmid) * f4        # conv1 chunk acc
        mid = subl(rows1) * W8 * lanes(cmid) * in_bytes
        mcat = subl(rows1) * W8 * lanes(3 * cmid) * in_bytes            # folded conv2 LHS
        a2 = subl(min(row_chunk, th) * W8) * lanes(cout) * f4           # conv2 chunk acc
        ob = 2 * subl(th) * W8 * lanes(cout) * out_bytes                # 2-buffered out
        wts = 2 * 3 * (subl(3 * cin) * lanes(cmid)
                       + subl(3 * cmid) * lanes(cout)) * in_bytes
        return xin + xcat + a1 + mid + mcat + a2 + ob + wts

    hi = min(max_tile_h, max(8, -(-H // 8) * 8))
    best, th = 8, 8
    while th <= hi:
        if working_set(th) <= budget_bytes:
            best = th
        th += 8
    return best


def double_conv(x_nchw, w1, b1, w2, b2, *, tile_h=None, row_chunk=16,
                compute_dtype=jnp.bfloat16, out_dtype=jnp.bfloat16,
                vmem_limit_bytes=None, input_buffering=None):
    """x_nchw: (B, Cin, H, W); w1: (Cmid, Cin, 3, 3); w2: (Cout, Cmid, 3, 3)."""
    B, Cin, H, W = x_nchw.shape
    Cmid = w1.shape[0]
    Cout = w2.shape[0]
    W8 = max(8, -(-W // 8) * 8)                 # W padded to a sublane multiple
    row_chunk = max(1, int(row_chunk))

    budget, vmem_limit_auto, max_th = _default_vmem_params()
    if vmem_limit_bytes is None:
        vmem_limit_bytes = vmem_limit_auto

    in_bytes = jnp.dtype(compute_dtype).itemsize
    out_bytes = jnp.dtype(out_dtype).itemsize
    TH = tile_h if tile_h is not None else _pick_tile_h(
        H, W8, Cin, Cmid, Cout, in_bytes=in_bytes, out_bytes=out_bytes,
        row_chunk=row_chunk, budget_bytes=budget, max_tile_h=max_th)
    assert TH >= 1, "row tile must be positive"
    nT = -(-H // TH)
    H_pad = nT * TH

    # NHWC + compute-dtype cast + zero padding (2-row / 1-col conv halo, plus
    # W->W8 and H->H_pad alignment padding), then gather the overlapping
    # per-tile row windows so the kernel needs no in-kernel halo stitching.
    # Under jit these fuse into one producer pass over the input.
    x = jnp.transpose(x_nchw, (0, 2, 3, 1)).astype(compute_dtype)
    xp = jnp.pad(x, ((0, 0), (2, 2 + H_pad - H), (1, 1 + W8 - W), (0, 0)))
    row_idx = jnp.arange(nT)[:, None] * TH + jnp.arange(TH + 4)[None, :]
    x_tiles = xp[:, row_idx].reshape(B * nT, TH + 4, W8 + 2, Cin)

    # Fold the 3 horizontal taps into the contraction dim of the weights.
    w1f = jnp.transpose(w1, (2, 3, 1, 0)).reshape(3, 3 * Cin, Cmid).astype(compute_dtype)
    w2f = jnp.transpose(w2, (2, 3, 1, 0)).reshape(3, 3 * Cmid, Cout).astype(compute_dtype)
    b1_2d = b1.reshape(1, Cmid).astype(jnp.float32)
    b2_2d = b2.reshape(1, Cout).astype(jnp.float32)

    kernel = functools.partial(double_conv_kernel, h_img=H, w_img=W,
                               row_chunk=row_chunk)

    x_map = lambda b, t: (b * nT + t, 0, 0, 0)
    if input_buffering is None or input_buffering == 2:
        x_spec = pl.BlockSpec((1, TH + 4, W8 + 2, Cin), x_map)
    else:  # optional deeper input pipelining (e.g. 3 on v6e if DMA is exposed)
        x_spec = pl.BlockSpec((1, TH + 4, W8 + 2, Cin), x_map,
                              pipeline_mode=pl.Buffered(input_buffering))

    out_nhwc = pl.pallas_call(
        kernel,
        out_shape=jax.ShapeDtypeStruct((B, H_pad, W8, Cout), out_dtype),
        grid_spec=pltpu.PrefetchScalarGridSpec(
            num_scalar_prefetch=0,
            grid=(B, nT),
            in_specs=[
                x_spec,
                pl.BlockSpec((3, 3 * Cin, Cmid), lambda b, t: (0, 0, 0)),
                pl.BlockSpec((1, Cmid), lambda b, t: (0, 0)),
                pl.BlockSpec((3, 3 * Cmid, Cout), lambda b, t: (0, 0, 0)),
                pl.BlockSpec((1, Cout), lambda b, t: (0, 0)),
            ],
            out_specs=pl.BlockSpec((1, TH, W8, Cout), lambda b, t: (b, t, 0, 0)),
        ),
        compiler_params=pltpu.CompilerParams(
            # batch and row-tile steps are independent -> megacore sharding
            dimension_semantics=("parallel", "parallel"),
            vmem_limit_bytes=vmem_limit_bytes,
        ),
    )(x_tiles, w1f, b1_2d, w2f, b2_2d)

    out_nhwc = out_nhwc[:, :H, :W]
    return jnp.transpose(out_nhwc, (0, 3, 1, 2))


# --------------------------------------------------------------------------- #
# Reference + demo
# --------------------------------------------------------------------------- #
def _ref_double_conv(x, w1, b1, w2, b2, operand_dtype):
    """conv -> conv (no BN/ReLU), optionally mirroring the kernel's bf16
    operand/mid rounding (f32 accumulation either way)."""
    def cast(a):
        return a.astype(operand_dtype).astype(jnp.float32)

    def conv(a, w, b):
        y = lax.conv_general_dilated(
            cast(a), cast(w), window_strides=(1, 1), padding="SAME",
            dimension_numbers=("NCHW", "OIHW", "NCHW"),
            precision=lax.Precision.HIGHEST)
        return y + b.astype(jnp.float32)[None, :, None, None]

    return conv(conv(x, w1, b1), w2, b2)


if __name__ == "__main__":
    # DoubleConv(in_channels=4, out_channels=4, mid_channels=8)
    B, Cin, H, W = 2, 4, 16, 16
    Cmid, Cout = 8, 4

    key = jax.random.PRNGKey(0)
    k1, k2, k3, k4, k5 = jax.random.split(key, 5)
    x = jax.random.normal(k1, (B, Cin, H, W), jnp.float32)
    w1 = jax.random.normal(k2, (Cmid, Cin, 3, 3), jnp.float32) * 0.1
    b1 = jax.random.normal(k3, (Cmid,), jnp.float32) * 0.1
    w2 = jax.random.normal(k4, (Cout, Cmid, 3, 3), jnp.float32) * 0.1
    b2 = jax.random.normal(k5, (Cout,), jnp.float32) * 0.1

    fn = jax.jit(double_conv,
                 static_argnames=("tile_h", "row_chunk", "compute_dtype",
                                  "out_dtype", "vmem_limit_bytes",
                                  "input_buffering"))

    # Force multiple row tiles (first / interior / last tile paths), bf16 out.
    out_tiled = jax.block_until_ready(fn(x, w1, b1, w2, b2, tile_h=4))
    # Auto-chosen tile (single tile at this size), f32 output path.
    out_f32 = jax.block_until_ready(fn(x, w1, b1, w2, b2, out_dtype=jnp.float32))

    assert out_tiled.shape == (B, Cout, H, W)
    assert out_f32.shape == (B, Cout, H, W)

    ref_bf16 = _ref_double_conv(x, w1, b1, w2, b2, jnp.bfloat16)  # matches kernel rounding
    ref_f32 = _ref_double_conv(x, w1, b1, w2, b2, jnp.float32)    # exact PyTorch semantics

    assert jnp.allclose(out_f32, ref_bf16, atol=2e-2, rtol=2e-2), \
        "mismatch vs bf16-operand reference"
    assert jnp.allclose(out_f32, ref_f32, atol=5e-2, rtol=5e-2), \
        "mismatch vs f32 reference"
    assert jnp.allclose(out_tiled.astype(jnp.float32), out_f32,
                        atol=2e-2, rtol=2e-2), \
        "result depends on tile size / output dtype"

    print("KERNEL_OK")
</pallas_src>

<mosaic_0001>
module attributes {stable_mosaic.version = 11 : i64} {
  func.func @double_conv_kernel(%arg0: i32, %arg1: i32, %arg2: memref<1x8x18x4xbf16, #tpu.memory_space<vmem>>, %arg3: memref<3x12x8xbf16, #tpu.memory_space<vmem>>, %arg4: memref<1x8xf32, #tpu.memory_space<vmem>>, %arg5: memref<3x24x4xbf16, #tpu.memory_space<vmem>>, %arg6: memref<1x4xf32, #tpu.memory_space<vmem>>, %arg7: memref<1x4x16x4xbf16, #tpu.memory_space<vmem>>) attributes {dimension_semantics = [#tpu.dimension_semantics<parallel>, #tpu.dimension_semantics<parallel>], iteration_bounds = array<i64: 2, 4>, scalar_prefetch = 0 : i64, scratch_operands = 0 : i64, tpu.core_type = #tpu.core_type<tc>, window_params = [{transform_indices = @transform_0, window_bounds = array<i64: 1, 8, 18, 4>}, {pipeline_mode = #tpu.pipeline_mode<synchronous>, transform_indices = @transform_1, window_bounds = array<i64: 3, 12, 8>}, {pipeline_mode = #tpu.pipeline_mode<synchronous>, transform_indices = @transform_2, window_bounds = array<i64: 1, 8>}, {pipeline_mode = #tpu.pipeline_mode<synchronous>, transform_indices = @transform_3, window_bounds = array<i64: 3, 24, 4>}, {pipeline_mode = #tpu.pipeline_mode<synchronous>, transform_indices = @transform_4, window_bounds = array<i64: 1, 4>}, {transform_indices = @transform_5, window_bounds = array<i64: 1, 4, 16, 4>}]} {
    %c0 = arith.constant 0 : index
    %c0_0 = arith.constant 0 : index
    %c0_1 = arith.constant 0 : index
    %c0_2 = arith.constant 0 : index
    %0 = vector.load %arg2[%c0, %c0_0, %c0_1, %c0_2] : memref<1x8x18x4xbf16, #tpu.memory_space<vmem>>, vector<1x8x18x4xbf16>
    %1 = vector.shape_cast %0 : vector<1x8x18x4xbf16> to vector<8x18x4xbf16>
    %2 = vector.extract_strided_slice %1 {offsets = [0, 0, 0], sizes = [8, 16, 4], strides = [1, 1, 1]} : vector<8x18x4xbf16> to vector<8x16x4xbf16>
    %3 = vector.extract_strided_slice %1 {offsets = [0, 1, 0], sizes = [8, 16, 4], strides = [1, 1, 1]} : vector<8x18x4xbf16> to vector<8x16x4xbf16>
    %4 = vector.extract_strided_slice %1 {offsets = [0, 2, 0], sizes = [8, 16, 4], strides = [1, 1, 1]} : vector<8x18x4xbf16> to vector<8x16x4xbf16>
    %5 = tpu.concatenate %2, %3, %4 in 2 : vector<8x16x4xbf16>, vector<8x16x4xbf16>, vector<8x16x4xbf16> -> vector<8x16x12xbf16>
    %c0_3 = arith.constant 0 : index
    %c0_4 = arith.constant 0 : index
    %c0_5 = arith.constant 0 : index
    %6 = vector.load %arg3[%c0_3, %c0_4, %c0_5] : memref<3x12x8xbf16, #tpu.memory_space<vmem>>, vector<1x12x8xbf16>
    %7 = vector.shape_cast %6 : vector<1x12x8xbf16> to vector<12x8xbf16>
    %c1 = arith.constant 1 : index
    %c0_6 = arith.constant 0 : index
    %c0_7 = arith.constant 0 : index
    %8 = vector.load %arg3[%c1, %c0_6, %c0_7] : memref<3x12x8xbf16, #tpu.memory_space<vmem>>, vector<1x12x8xbf16>
    %9 = vector.shape_cast %8 : vector<1x12x8xbf16> to vector<12x8xbf16>
    %c2 = arith.constant 2 : index
    %c0_8 = arith.constant 0 : index
    %c0_9 = arith.constant 0 : index
    %10 = vector.load %arg3[%c2, %c0_8, %c0_9] : memref<3x12x8xbf16, #tpu.memory_space<vmem>>, vector<1x12x8xbf16>
    %11 = vector.shape_cast %10 : vector<1x12x8xbf16> to vector<12x8xbf16>
    %c0_10 = arith.constant 0 : index
    %c0_11 = arith.constant 0 : index
    %c0_12 = arith.constant 0 : index
    %12 = vector.load %arg5[%c0_10, %c0_11, %c0_12] : memref<3x24x4xbf16, #tpu.memory_space<vmem>>, vector<1x24x4xbf16>
    %13 = vector.shape_cast %12 : vector<1x24x4xbf16> to vector<24x4xbf16>
    %c1_13 = arith.constant 1 : index
    %c0_14 = arith.constant 0 : index
    %c0_15 = arith.constant 0 : index
    %14 = vector.load %arg5[%c1_13, %c0_14, %c0_15] : memref<3x24x4xbf16, #tpu.memory_space<vmem>>, vector<1x24x4xbf16>
    %15 = vector.shape_cast %14 : vector<1x24x4xbf16> to vector<24x4xbf16>
    %c2_16 = arith.constant 2 : index
    %c0_17 = arith.constant 0 : index
    %c0_18 = arith.constant 0 : index
    %16 = vector.load %arg5[%c2_16, %c0_17, %c0_18] : memref<3x24x4xbf16, #tpu.memory_space<vmem>>, vector<1x24x4xbf16>
    %17 = vector.shape_cast %16 : vector<1x24x4xbf16> to vector<24x4xbf16>
    %c0_19 = arith.constant 0 : index
    %c0_20 = arith.constant 0 : index
    %18 = vector.load %arg4[%c0_19, %c0_20] : memref<1x8xf32, #tpu.memory_space<vmem>>, vector<1x8xf32>
    %c0_21 = arith.constant 0 : index
    %c0_22 = arith.constant 0 : index
    %19 = vector.load %arg6[%c0_21, %c0_22] : memref<1x4xf32, #tpu.memory_space<vmem>>, vector<1x4xf32>
    %20 = vector.extract_strided_slice %5 {offsets = [0, 0, 0], sizes = [6, 16, 12], strides = [1, 1, 1]} : vector<8x16x12xbf16> to vector<6x16x12xbf16>
    %21 = vector.shape_cast %20 : vector<6x16x12xbf16> to vector<96x12xbf16>
    %cst = arith.constant dense<0.000000e+00> : vector<96x8xf32>
    %22 = tpu.matmul %21, %7, %cst {dimension_numbers = #tpu.dot_dimension_numbers<[1], [0], [0], [1], [0, 0, 1, 1], [], []>} : vector<96x12xbf16>, vector<12x8xbf16>, vector<96x8xf32> -> vector<96x8xf32>
    %23 = vector.extract_strided_slice %5 {offsets = [1, 0, 0], sizes = [6, 16, 12], strides = [1, 1, 1]} : vector<8x16x12xbf16> to vector<6x16x12xbf16>
    %24 = vector.shape_cast %23 : vector<6x16x12xbf16> to vector<96x12xbf16>
    %cst_23 = arith.constant dense<0.000000e+00> : vector<96x8xf32>
    %25 = tpu.matmul %24, %9, %cst_23 {dimension_numbers = #tpu.dot_dimension_numbers<[1], [0], [0], [1], [0, 0, 1, 1], [], []>} : vector<96x12xbf16>, vector<12x8xbf16>, vector<96x8xf32> -> vector<96x8xf32>
    %26 = arith.addf %22, %25 : vector<96x8xf32>
    %27 = vector.extract_strided_slice %5 {offsets = [2, 0, 0], sizes = [6, 16, 12], strides = [1, 1, 1]} : vector<8x16x12xbf16> to vector<6x16x12xbf16>
    %28 = vector.shape_cast %27 : vector<6x16x12xbf16> to vector<96x12xbf16>
    %cst_24 = arith.constant dense<0.000000e+00> : vector<96x8xf32>
    %29 = tpu.matmul %28, %11, %cst_24 {dimension_numbers = #tpu.dot_dimension_numbers<[1], [0], [0], [1], [0, 0, 1, 1], [], []>} : vector<96x12xbf16>, vector<12x8xbf16>, vector<96x8xf32> -> vector<96x8xf32>
    %30 = arith.addf %26, %29 : vector<96x8xf32>
    %31 = vector.broadcast %18 : vector<1x8xf32> to vector<96x8xf32>
    %32 = arith.addf %30, %31 : vector<96x8xf32>
    %33 = vector.shape_cast %32 : vector<96x8xf32> to vector<6x16x8xf32>
    %c4_i32 = arith.constant 4 : i32
    %34 = arith.muli %arg1, %c4_i32 : i32
    %c1_i32 = arith.constant 1 : i32
    %35 = arith.subi %34, %c1_i32 : i32
    %c0_i32 = arith.constant 0 : i32
    %36 = arith.addi %35, %c0_i32 : i32
    %37 = tpu.iota {dimensions = array<i32: 0>} : vector<6x16x8xi32>
    %38 = vector.broadcast %36 : i32 to vector<6x16x8xi32>
    %39 = arith.addi %38, %37 : vector<6x16x8xi32>
    %c0_i32_25 = arith.constant 0 : i32
    %40 = vector.broadcast %c0_i32_25 : i32 to vector<6x16x8xi32>
    %41 = arith.cmpi sge, %39, %40 : vector<6x16x8xi32>
    %c16_i32 = arith.constant 16 : i32
    %42 = vector.broadcast %c16_i32 : i32 to vector<6x16x8xi32>
    %43 = arith.cmpi slt, %39, %42 : vector<6x16x8xi32>
    %44 = arith.andi %41, %43 : vector<6x16x8xi1>
    %cst_26 = arith.constant 0.000000e+00 : f32
    %45 = vector.broadcast %cst_26 : f32 to vector<6x16x8xf32>
    %46 = arith.select %44, %33, %45 : vector<6x16x8xi1>, vector<6x16x8xf32>
    %47 = arith.truncf %46 : vector<6x16x8xf32> to vector<6x16x8xbf16>
    %cst_27 = arith.constant 0.000000e+00 : bf16
    %48 = vector.broadcast %cst_27 : bf16 to vector<6x1x8xbf16>
    %49 = vector.extract_strided_slice %47 {offsets = [0, 0, 0], sizes = [6, 15, 8], strides = [1, 1, 1]} : vector<6x16x8xbf16> to vector<6x15x8xbf16>
    %50 = tpu.concatenate %48, %49 in 1 : vector<6x1x8xbf16>, vector<6x15x8xbf16> -> vector<6x16x8xbf16>
    %51 = vector.extract_strided_slice %47 {offsets = [0, 1, 0], sizes = [6, 15, 8], strides = [1, 1, 1]} : vector<6x16x8xbf16> to vector<6x15x8xbf16>
    %52 = tpu.concatenate %51, %48 in 1 : vector<6x15x8xbf16>, vector<6x1x8xbf16> -> vector<6x16x8xbf16>
    %53 = tpu.concatenate %50, %47, %52 in 2 : vector<6x16x8xbf16>, vector<6x16x8xbf16>, vector<6x16x8xbf16> -> vector<6x16x24xbf16>
    %54 = vector.extract_strided_slice %53 {offsets = [0, 0, 0], sizes = [4, 16, 24], strides = [1, 1, 1]} : vector<6x16x24xbf16> to vector<4x16x24xbf16>
    %55 = vector.shape_cast %54 : vector<4x16x24xbf16> to vector<64x24xbf16>
    %cst_28 = arith.constant dense<0.000000e+00> : vector<64x4xf32>
    %56 = tpu.matmul %55, %13, %cst_28 {dimension_numbers = #tpu.dot_dimension_numbers<[1], [0], [0], [1], [0, 0, 1, 1], [], []>} : vector<64x24xbf16>, vector<24x4xbf16>, vector<64x4xf32> -> vector<64x4xf32>
    %57 = vector.extract_strided_slice %53 {offsets = [1, 0, 0], sizes = [4, 16, 24], strides = [1, 1, 1]} : vector<6x16x24xbf16> to vector<4x16x24xbf16>
    %58 = vector.shape_cast %57 : vector<4x16x24xbf16> to vector<64x24xbf16>
    %cst_29 = arith.constant dense<0.000000e+00> : vector<64x4xf32>
    %59 = tpu.matmul %58, %15, %cst_29 {dimension_numbers = #tpu.dot_dimension_numbers<[1], [0], [0], [1], [0, 0, 1, 1], [], []>} : vector<64x24xbf16>, vector<24x4xbf16>, vector<64x4xf32> -> vector<64x4xf32>
    %60 = arith.addf %56, %59 : vector<64x4xf32>
    %61 = vector.extract_strided_slice %53 {offsets = [2, 0, 0], sizes = [4, 16, 24], strides = [1, 1, 1]} : vector<6x16x24xbf16> to vector<4x16x24xbf16>
    %62 = vector.shape_cast %61 : vector<4x16x24xbf16> to vector<64x24xbf16>
    %cst_30 = arith.constant dense<0.000000e+00> : vector<64x4xf32>
    %63 = tpu.matmul %62, %17, %cst_30 {dimension_numbers = #tpu.dot_dimension_numbers<[1], [0], [0], [1], [0, 0, 1, 1], [], []>} : vector<64x24xbf16>, vector<24x4xbf16>, vector<64x4xf32> -> vector<64x4xf32>
    %64 = arith.addf %60, %63 : vector<64x4xf32>
    %65 = vector.broadcast %19 : vector<1x4xf32> to vector<64x4xf32>
    %66 = arith.addf %64, %65 : vector<64x4xf32>
    %67 = vector.shape_cast %66 : vector<64x4xf32> to vector<4x16x4xf32>
    %68 = arith.truncf %67 : vector<4x16x4xf32> to vector<4x16x4xbf16>
    %c0_31 = arith.constant 0 : index
    %c0_32 = arith.constant 0 : index
    %c0_33 = arith.constant 0 : index
    %c0_34 = arith.constant 0 : index
    %69 = vector.load %arg7[%c0_31, %c0_32, %c0_33, %c0_34] : memref<1x4x16x4xbf16, #tpu.memory_space<vmem>>, vector<1x4x16x4xbf16>
    %70 = vector.shape_cast %69 : vector<1x4x16x4xbf16> to vector<4x16x4xbf16>
    %71 = vector.shape_cast %68 : vector<4x16x4xbf16> to vector<1x4x16x4xbf16>
    tpu.vector_store %arg7[%c0_31, %c0_32, %c0_33, %c0_34], %71 {strides = array<i32>} : memref<1x4x16x4xbf16, #tpu.memory_space<vmem>>, vector<1x4x16x4xbf16>,
    return
  }
  func.func @transform_0(%arg0: i32, %arg1: i32) -> (i32, i32, i32, i32) {
    %c4_i32 = arith.constant 4 : i32
    %0 = arith.muli %arg0, %c4_i32 : i32
    %1 = arith.addi %0, %arg1 : i32
    %c0_i32 = arith.constant 0 : i32
    %c0_i32_0 = arith.constant 0 : i32
    %c0_i32_1 = arith.constant 0 : i32
    %c0_i32_2 = arith.constant 0 : i32
    return %1, %c0_i32, %c0_i32_0, %c0_i32_1 : i32, i32, i32, i32
  }
  func.func @transform_1(%arg0: i32, %arg1: i32) -> (i32, i32, i32) {
    %c0_i32 = arith.constant 0 : i32
    %c0_i32_0 = arith.constant 0 : i32
    %c0_i32_1 = arith.constant 0 : i32
    %c0_i32_2 = arith.constant 0 : i32
    return %c0_i32, %c0_i32_0, %c0_i32_1 : i32, i32, i32
  }
  func.func @transform_2(%arg0: i32, %arg1: i32) -> (i32, i32) {
    %c0_i32 = arith.constant 0 : i32
    %c0_i32_0 = arith.constant 0 : i32
    %c0_i32_1 = arith.constant 0 : i32
    return %c0_i32, %c0_i32_0 : i32, i32
  }
  func.func @transform_3(%arg0: i32, %arg1: i32) -> (i32, i32, i32) {
    %c0_i32 = arith.constant 0 : i32
    %c0_i32_0 = arith.constant 0 : i32
    %c0_i32_1 = arith.constant 0 : i32
    %c0_i32_2 = arith.constant 0 : i32
    return %c0_i32, %c0_i32_0, %c0_i32_1 : i32, i32, i32
  }
  func.func @transform_4(%arg0: i32, %arg1: i32) -> (i32, i32) {
    %c0_i32 = arith.constant 0 : i32
    %c0_i32_0 = arith.constant 0 : i32
    %c0_i32_1 = arith.constant 0 : i32
    return %c0_i32, %c0_i32_0 : i32, i32
  }
  func.func @transform_5(%arg0: i32, %arg1: i32) -> (i32, i32, i32, i32) {
    %c0_i32 = arith.constant 0 : i32
    %c0_i32_0 = arith.constant 0 : i32
    %c0_i32_1 = arith.constant 0 : i32
    return %arg0, %arg1, %c0_i32, %c0_i32_0 : i32, i32, i32, i32
  }
}

</mosaic_0001>

<bundles_post_ra>
// kernel: double_conv.1
= control target key start
LH: loop header
LB: loop body
LE: loop exit
PB: predicated region body
PF: predicated region fallthrough
CT: control target
= control target key end

     0   :  { %s1877_s18 = smov 0   ;;  %s1879_s19 = smov 0   ;;  %s2301_s0 = inlined_call_operand.vmem [shape: bf16[8,8,18,4], index: 0, kind: input, shape index: {}]   ;;  %s2302_s1 = inlined_call_operand.vmem [shape: bf16[3,12,8], index: 1, kind: input, shape index: {}]   ;;  %s2303_s2 = inlined_call_operand.vmem [shape: f32[1,8], index: 2, kind: input, shape index: {}]   ;;  %s2304_s3 = inlined_call_operand.vmem [shape: bf16[3,24,4], index: 3, kind: input, shape index: {}]   ;;  %s2305_s4 = inlined_call_operand.vmem [shape: f32[1,4], index: 4, kind: input, shape index: {}]   ;;  %s2306_s5 = inlined_call_operand.vmem [shape: bf16[2,16,16,4], index: 5, kind: output, shape index: {}]  }
   0x1   :  { %s1881_s20 = smov 0   ;;  %s1883_s21 = smov 0  }
   0x2   :  { %s1885_s22 = smov 0  }
   0x3 LB: > { %s24_s23 = sadd.s32 1, %s1834_s20  ;;  %s27_s24 = sadd.s32 1, %s1838_s21  ;;  %s1842_s22 = sphi %s1885_s22, %s15_s22   ;;  %s1838_s21 = sphi %s1883_s21, %s2322_s21   ;;  %s1834_s20 = sphi %s1881_s20, %s2321_s20   ;;  %s1830_s19 = sphi %s1879_s19, %s2320_s19   ;;  %s1826_s18 = sphi %s1877_s18, %s2319_s18  }
   0x4   : > { %p25_p0 = scmp.ge.s32.totalorder %s24_s23, 4  ;;  %p1475_p1 = scmp.ge.s32.totalorder %s1842_s22, 1 }
   0x5   : > { %p209_p2 = scmp.lt.s32.totalorder %s1842_s22, 9 }
   0x6   : > { %s2324_s23 = smov (%p25_p0, %s24_s23), 0  ;;  %s2326_s24 = smov (!%p25_p0, %s27_s24), %s1838_s21 }
   0x7   : > { %p210_p3 = pnand %p1475_p1, %p209_p2  ;;  %p29_p4 = scmp.ge.s32.totalorder %s2326_s24, 2 }
   0x8   : > { %s1476_s25 = sshll.u32 (!%p210_p3), %s1830_s19, 2  ;;  %v1795_v0 = vld [vmem:[%s2302_s1 + $0x8] sm:$0x3f] (!%p210_p3)   ;;  %vm580_vm0 = vcmask (!%p210_p3), 1045504   ;;  %vm353_vm1 = vsmask.f32 (!%p210_p3), 7424 }
   0x9   : > { %s2328_s24 = smov (%p29_p4, %s2326_s24), 0  ;;  %213 = sbr.rel (%p210_p3) target bundleno = 798 (0x31e), region = 40 }
   0xa   : > { %s245_s26 = sadd.s32 (!%p210_p3), %s1826_s18, %s1476_s25  ;;  %vm466_vm2 = vcmask (!%p210_p3), 1046528   ;;  %1728 = vmatprep.subr.msk.bf16.mxu0 (!%p210_p3), %vm580_vm0, %v1795_v0  ;;  %v582_v1 = vsel (!%p210_p3), %vm580_vm0, %v1795_v0, 0  ;;  %1729 = vmatprep.subr.msk.bf16.mxu1 (!%p210_p3), %vm580_vm0, %v1795_v0  ;;  %s1844_s8 = smov (!%p210_p3), 8   ;;  %vm507_vm3 = vcmask (!%p210_p3), 31744   ;;  %vm524_vm4 = vcmask (!%p210_p3), 64512  }
   0xb   : > { %p246_p5 = scmp.lt.s32.totalorder (!%p210_p3), %s245_s26, 7  ;;  %1609 = vmatpush3.bf16.msra.mxu0 (!%p210_p3), %v582_v1  ;;  %1687 = vmatpush3.bf16.msra.mxu1 (!%p210_p3), %v582_v1  ;;  %s1845_s9 = smov (!%p210_p3), 4   ;;  %vm567_vm5 = vcmask (!%p210_p3), 97280   ;;  %vm1089_vm12 = vcmask (!%p210_p3), 1043456   ;;  %vm996_vm15 = vcmask (!%p210_p3), 1047552  }
   0xc   : > { %s2067_s14 = sshll.u32 (!%p210_p3), %s1826_s18, 2  ;;  %s1846_s30 = smov (!%p210_p3), 16  }
   0xd   : > { %s1531_s15 = sadd.s32 (!%p210_p3), 4294967295, %s2067_s14  ;;  %p256_p6 = scmp.lt.s32.totalorder (!%p210_p3), %s2067_s14, 15 }
   0xe   : > { %p254_p7 = scmp.lt.s32.totalorder (!%p210_p3), %s1830_s19, 1 }
  0x10   : > { %s2330_s26 = smov (!%p246_p5, %s245_s26), 7  ;;  %s2332_s14 = smov (!%p256_p6, %s2067_s14), 15 }
  0x11   : > { %s1735_s27 = smul.u32 96, %s2330_s26  ;;  %s2334_s19 = smov (!%p254_p7, %s1830_s19), 1 }
  0x12   : > { %s1479_s12 = sshll.u32 %s2332_s14, 1  ;;  %s1480_s13 = sshll.u32 %s2334_s19, 5 }
  0x13   : > { %s1919_s7 = scalar_lea.vmem %s2301_s0, %s1735_s27 }
  0x14   : > { %v1925_v2 = vld [vmem:[%s1919_s7 + $0xc] sm:$0xff]   ;;  %v1780_v3 = vld [vmem:[%s1919_s7 + $0x14] ss:$0 sps:$4 sm:$0x11]   ;;  %v1929_v4 = vld [vmem:[%s1919_s7 + $0x18] sm:$0xff]  }
  0x15   : > { %v367_v5 = vshrl.u32 %v1925_v2, 16  ;;  %v369_v6 = vshll.u32 %v1925_v2, 16  ;;  %v374_v7 = vshll.u32 %v1780_v3, 16  ;;  %v470_v8 = vrot.slane %v1925_v2, 1  ;;  %v1939_v16 = vld [vmem:[%s1919_s7] sm:$0xff]   ;;  %v1953_v34 = vld [vmem:[%s1919_s7 + $0x30] sm:$0xff]  }
  0x16   : > { %v471_v9 = vrot.slane %v1780_v3, 1  ;;  %v1782_v10 = vld [vmem:[%s1919_s7 + $0x20] ss:$0 sps:$4 sm:$0x11]   ;;  %v379_v11 = vshrl.u32 %v1929_v4, 16  ;;  %v381_v12 = vshll.u32 %v1929_v4, 16 }
  0x17   : > { %v371_v13 = vrot.slane %v369_v6, 1  ;;  %v376_v14 = vrot.slane %v374_v7, 1  ;;  %v473_v15 = vrot.slane %v1929_v4, 1  ;;  %v386_v19 = vshll.u32 %v1782_v10, 16  ;;  %v1943_v21 = vld [vmem:[%s1919_s7 + $0x24] sm:$0xff]   ;;  %v1964_v43 = vld [vmem:[%s1919_s7 + $0x3c] sm:$0xff]  }
  0x18   : > { %v472_v17 = vsel %vm466_vm2, %v470_v8, %v471_v9  ;;  %v383_v18 = vrot.slane %v381_v12, 1  ;;  %v474_v20 = vrot.slane %v1782_v10, 1  ;;  %v1784_v23 = vld [vmem:[%s1919_s7 + $0x8] ss:$0 sps:$4 sm:$0x11]   ;;  %v355_v24 = vshrl.u32 %v1939_v16, 16 }
  0x19   : > { %v372_v22 = vor.u32 %v371_v13, %v367_v5  ;;  %493 = vrot.lane.b32.xlu1 %v472_v17, %s1844_s8  ;;  %v357_v25 = vshll.u32 %v1939_v16, 16  ;;  %v467_v26 = vrot.slane %v1939_v16, 1  ;;  %v388_v28 = vrot.slane %v386_v19, 1  ;;  %v1786_v35 = vld [vmem:[%s1919_s7 + $0x2c] ss:$0 sps:$4 sm:$0x11]  }
  0x1a   : > { %v384_v27 = vor.u32 %v383_v18, %v379_v11  ;;  %v475_v29 = vsel %vm466_vm2, %v473_v15, %v474_v20  ;;  %v362_v32 = vshll.u32 %v1784_v23, 16  ;;  %v468_v33 = vrot.slane %v1784_v23, 1  ;;  %v1788_v48 = vld [vmem:[%s1919_s7 + $0x38] ss:$0 sps:$4 sm:$0x11]   ;;  %v1978_v63 = vld [vmem:[%s1919_s7 + $0x48] sm:$0xff]  }
  0x1b   : > { %v377_v30 = vsel %vm353_vm1, %v372_v22, %v376_v14  ;;  %v359_v31 = vrot.slane %v357_v25, 1  ;;  %v391_v36 = vshrl.u32 %v1943_v21, 16  ;;  %v393_v37 = vshll.u32 %v1943_v21, 16  ;;  %v1790_v56 = vld [vmem:[%s1919_s7 + $0x44] ss:$0 sps:$4 sm:$0x11]  }
  0x1c   : > { %452 = vrot.lane.b32.xlu0 %v377_v30, %s1845_s9  ;;  %v476_v38 = vrot.slane %v1943_v21, 1  ;;  %v389_v39 = vsel %vm353_vm1, %v384_v27, %v388_v28  ;;  %v364_v41 = vrot.slane %v362_v32, 1  ;;  %v469_v42 = vsel %vm466_vm2, %v467_v26, %v468_v33  ;;  %v1792_v0 = vld [vmem:[%s1919_s7 + $0x50] ss:$0 sps:$4 sm:$0x11]   ;;  %v1984_v6 = vld [vmem:[%s1919_s7 + $0x54] sm:$0xff]  }
  0x1d   : > { %495 = vrot.lane.b32.xlu1 %v475_v29, %s1844_s8  ;;  %v360_v40 = vor.u32 %v359_v31, %v355_v24  ;;  %v395_v44 = vrot.slane %v393_v37, 1  ;;  %v398_v45 = vshll.u32 %v1786_v35, 16  ;;  %v477_v46 = vrot.slane %v1786_v35, 1  ;;  %v1794_v10 = vld [vmem:[%s1919_s7 + $0x5c] ss:$0 sps:$4 sm:$0x11]  }
  0x1e   : > { %v405_v47 = vshll.u32 %v1953_v34, 16  ;;  %v403_v49 = vshrl.u32 %v1953_v34, 16  ;;  %v415_v52 = vshrl.u32 %v1964_v43, 16  ;;  %v410_v55 = vshll.u32 %v1788_v48, 16  ;;  %v1796_v14 = vld [vmem:[%s2302_s1] sm:$0x3f]  }
  0x1f   : > { %v365_v50 = vsel %vm353_vm1, %v360_v40, %v364_v41  ;;  %v396_v53 = vor.u32 %v395_v44, %v391_v36  ;;  %v400_v54 = vrot.slane %v398_v45, 1  ;;  %v417_v57 = vshll.u32 %v1964_v43, 16  ;;  %1730 = vmatprep.subr.msk.bf16.mxu0 %vm580_vm0, %v1796_v14 }
  0x20   : > { %454 = vrot.lane.b32.xlu0 %v389_v39, %s1845_s9  ;;  %v407_v51 = vrot.slane %v405_v47, 1  ;;  %v478_v58 = vsel %vm466_vm2, %v476_v38, %v477_v46  ;;  %v412_v59 = vrot.slane %v410_v55, 1  ;;  %v422_v61 = vshll.u32 %v1790_v56, 16 }
  0x21   : > { %491 = vrot.lane.b32.xlu1 %v469_v42, %s1844_s8  ;;  %v419_v60 = vrot.slane %v417_v57, 1  ;;  %v401_v1 = vsel %vm353_vm1, %v396_v53, %v400_v54  ;;  %v482_v7 = vrot.slane %v1964_v43, 1  ;;  %v483_v8 = vrot.slane %v1790_v56, 1 }
  0x22   : > { %v408_v62 = vor.u32 %v407_v51, %v403_v49  ;;  %v424_v5 = vrot.slane %v422_v61, 1  ;;  %v429_v9 = vshll.u32 %v1978_v63, 16  ;;  %v439_v12 = vshrl.u32 %v1984_v6, 16 }
  0x23   : > { %v420_v3 = vor.u32 %v419_v60, %v415_v52  ;;  %v441_v13 = vshll.u32 %v1984_v6, 16  ;;  %v479_v17 = vrot.slane %v1953_v34, 1  ;;  %v480_v18 = vrot.slane %v1788_v48, 1 }
  0x24   : > { %450 = vrot.lane.b32.xlu0 %v365_v50, %s1845_s9  ;;  %v413_v15 = vsel %vm353_vm1, %v408_v62, %v412_v59  ;;  %v446_v19 = vshll.u32 %v1794_v10, 16  ;;  %v427_v20 = vshrl.u32 %v1978_v63, 16  ;;  %v431_v22 = vrot.slane %v429_v9, 1  ;;  %v1797_v50 = vld [vmem:[%s2302_s1 + $0x10] sm:$0x3f]  }
  0x25   : > { %497 = vrot.lane.b32.xlu1 %v478_v58, %s1844_s8  ;;  %v425_v11 = vsel %vm353_vm1, %v420_v3, %v424_v5  ;;  %v434_v23 = vshll.u32 %v1792_v0, 16  ;;  %v443_v24 = vrot.slane %v441_v13, 1  ;;  %v484_v25 = vsel %vm466_vm2, %v482_v7, %v483_v8 }
  0x26   : > { %v448_v26 = vrot.slane %v446_v19, 1  ;;  %v481_v28 = vsel %vm466_vm2, %v479_v17, %v480_v18  ;;  %v432_v29 = vor.u32 %v431_v22, %v427_v20  ;;  %v488_v32 = vrot.slane %v1984_v6, 1  ;;  %v1798_v19 = vld [vmem:[%s2304_s3 + $0xc] sm:$0xff]   ;;  %v2087_v20 = vld [vmem:[%s2303_s2] ss:$0 sm:$0xff] }
  0x27   : > { %v444_v27 = vor.u32 %v443_v24, %v439_v12  ;;  %v436_v30 = vrot.slane %v434_v23, 1  ;;  %v489_v33 = vrot.slane %v1794_v10, 1  ;;  %v485_v36 = vrot.slane %v1978_v63, 1  ;;  %1650 = vmatprep.subr.bf16.mxu1 %v1798_v19 }
  0x28   : > { %456 = vrot.lane.b32.xlu0 %v401_v1, %s1845_s9  ;;  %v486_v37 = vrot.slane %v1792_v0, 1  ;;  %v673_v48 = vsel %vm580_vm0, %v1796_v14, 0  ;;  %v764_v59 = vsel %vm580_vm0, %v1797_v50, 0  ;;  %v2078_v17 = vstv %s1531_s15  ;;  %s260_s15 = sadd.s32 %s1480_s13, %s1479_s12 }
  0x29   : > { %460 = vrot.lane.b32.xlu1 %v425_v11, %s1845_s9  ;;  %v449_v31 = vsel %vm353_vm1, %v444_v27, %v448_v26  ;;  %v437_v35 = vsel %vm353_vm1, %v432_v29, %v436_v30  ;;  %v490_v38 = vsel %vm466_vm2, %v488_v32, %v489_v33  ;;  %v880_v18 = vadd.s32 1, %v2078_v17  ;;  %v1799_v30 = vld [vmem:[%s2304_s3 + $0x14] ss:$0 sps:$4 sm:$0xff]   ;;  %s1481_s18 = sshll.u32 %s260_s15, 2 }
  0x2a   : > { %v487_v39 = vsel %vm466_vm2, %v485_v36, %v486_v37  ;;  %vm885_vm8 = vcmp.ge.s32.totalorder %v2078_v17, 0  ;;  %vm891_vm9 = vcmp.lt.s32.totalorder %v2078_v17, 16  ;;  %v882_v29 = vadd.s32 3, %v2078_v17  ;;  %s262_s27 = scalar_lea.vmem %s2306_s5, %s1481_s18 }
  0x2b   : > { %vm886_vm6 = vcmp.ge.s32.totalorder %v880_v18, 0  ;;  %vm892_vm7 = vcmp.lt.s32.totalorder %v880_v18, 16  ;;  %vm897_vm11 = vmand %vm885_vm8, %vm891_vm9 }
  0x2c   : > { %458 = vrot.lane.b32.xlu0 %v413_v15, %s1845_s9  ;;  %vm898_vm10 = vmand %vm886_vm6, %vm892_vm7  ;;  %vm888_vm13 = vcmp.ge.s32.totalorder %v882_v29, 0  ;;  %vm894_vm14 = vcmp.lt.s32.totalorder %v882_v29, 16 }
  0x2d   : > { %501 = vrot.lane.b32.xlu1 %v484_v25, %s1844_s8 }
  0x30   : > { %499 = vrot.lane.b32.xlu0 %v481_v28, %s1844_s8 }
  0x31   : > { %464 = vrot.lane.b32.xlu1 %v449_v31, %s1845_s9 }
  0x34   : > { %462 = vrot.lane.b32.xlu0 %v437_v35, %s1845_s9  ;;  %v881_v35 = vadd.s32 2, %v2078_v17 }
  0x35   : > { %505 = vrot.lane.b32.xlu1 %v490_v38, %s1844_s8 }
  0x36   : > { %vm893_vm2 = vcmp.lt.s32.totalorder %v881_v35, 16 }
  0x38   : > { %503 = vrot.lane.b32.xlu0 %v487_v39, %s1844_s8  ;;  %v1091_v39 = vsel %vm1089_vm12, %v1799_v30, 0 }
  0x8b   : > { %v494_v40 = vpop.permute.xlu1 %493 }
  0x8e   : > { %v453_v41 = vpop.permute.xlu0 %452 }
  0x8f   : > { %v511_v42 = vsel %vm507_vm3, %v1925_v2, %v453_v41  ;;  %v496_v44 = vpop.permute.xlu1 %495 }
  0x90   : > { %v528_v45 = vsel %vm524_vm4, %v511_v42, %v494_v40 }
  0x91   : > { %1610 = vmatprep.mubr.msk.bf16.mxu0 %vm567_vm5, %v528_v45 }
  0x92   : > { %v455_v46 = vpop.permute.xlu0 %454 }
  0x93   : > { %v513_v47 = vsel %vm507_vm3, %v1929_v4, %v455_v46  ;;  %v492_v49 = vpop.permute.xlu1 %491 }
  0x94   : > { %v530_v51 = vsel %vm524_vm4, %v513_v47, %v496_v44 }
  0x95   : > { %1611 = vmatmul.mubr.msk.bf16.vlgmr.msra.gmra.mrb[0].mxu0 %vm567_vm5, %v530_v51 }
  0x96   : > { %1623 = vmatpush3.bf16.msra.mxu0 %v673_v48  ;;  %v451_v2 = vpop.permute.xlu0 %450 }
  0x97   : > { %v509_v52 = vsel %vm507_vm3, %v1939_v16, %v451_v2  ;;  %1731 = vmatprep.subr.msk.bf16.mxu0 %vm580_vm0, %v1797_v50  ;;  %v498_v53 = vpop.permute.xlu1 %497  ;;  %vm887_vm0 = vcmp.ge.s32.totalorder %v881_v35, 0  ;;  %v884_v2 = vadd.s32 5, %v2078_v17 }
  0x98   : > { %v526_v4 = vsel %vm524_vm4, %v509_v52, %v492_v49 }
  0x99   : > { %1624 = vmatprep.mubr.msk.bf16.mxu0 %vm567_vm5, %v526_v4  ;;  %vm890_vm6 = vcmp.ge.s32.totalorder %v884_v2, 0  ;;  %vm896_vm7 = vcmp.lt.s32.totalorder %v884_v2, 16 }
  0x9a   : > { %v457_v54 = vpop.permute.xlu0 %456 }
  0x9b   : > { %v515_v55 = vsel %vm507_vm3, %v1943_v21, %v457_v54  ;;  %v461_v56 = vpop.permute.xlu1 %460 }
  0x9c   : > { %v532_v57 = vsel %vm524_vm4, %v515_v55, %v498_v53  ;;  %v519_v16 = vsel %vm507_vm3, %v1964_v43, %v461_v56 }
  0x9d   : > { %1614 = vmatprep.mubr.msk.bf16.mxu1 %vm567_vm5, %v532_v57 }
  0x9e   : > { %v459_v58 = vpop.permute.xlu0 %458 }
  0x9f   : > { %v502_v60 = vpop.permute.xlu1 %501  ;;  %v517_v61 = vsel %vm507_vm3, %v1953_v34, %v459_v58 }
  0xa0   : > { %v536_v62 = vsel %vm524_vm4, %v519_v16, %v502_v60 }
  0xa1   : > { %1625 = vmatmul.mubr.msk.bf16.vlgmr.msra.gmra.mrb[0].mxu0 %vm567_vm5, %v528_v45 }
  0xa2   : > { %1637 = vmatpush3.bf16.msra.mxu0 %v764_v59  ;;  %1628 = vmatprep.mubr.msk.bf16.mxu0 %vm567_vm5, %v530_v51  ;;  %v500_v21 = vpop.permute.xlu0 %499 }
  0xa3   : > { %v534_v0 = vsel %vm524_vm4, %v517_v61, %v500_v21  ;;  %v465_v5 = vpop.permute.xlu1 %464 }
  0xa4   : > { %1615 = vmatmul.mubr.msk.bf16.vlgmr.msra.gmra.mrb[0].mxu1 %vm567_vm5, %v534_v0 }
  0xa5   : > { %1618 = vmatprep.mubr.msk.bf16.mxu1 %vm567_vm5, %v536_v62  ;;  %1651 = vmatpush3.bf16.msra.mxu1 %v1798_v19 }
  0xa6   : > { %v463_v1 = vpop.permute.xlu0 %462  ;;  %1732 = vmatprep.subr.msk.bf16.mxu1 %vm1089_vm12, %v1799_v30 }
  0xa7   : > { %v521_v43 = vsel %vm507_vm3, %v1978_v63, %v463_v1  ;;  %v523_v63 = vsel %vm507_vm3, %v1984_v6, %v465_v5  ;;  %v506_v7 = vpop.permute.xlu1 %505  ;;  %vm2109_vm3 = vmand %vm996_vm15, %vm353_vm1 }
  0xa8   : > { %v540_v8 = vsel %vm524_vm4, %v523_v63, %v506_v7  ;;  %vm2128_vm1 = vmand %vm887_vm0, %vm893_vm2  ;;  %vm1058_vm0 = vcmask 130048   ;;  %vm1080_vm2 = vcmask 195584  }
  0xa9   : > { %1629 = vmatmul.mubr.msk.bf16.gmra.mrb[4].mxu0 %vm567_vm5, %v532_v57  ;;  %1653 = vmatpush3.bf16.msra.mxu1 %v1091_v39 }
  0xaa   : > { %1632 = vmatprep.mubr.msk.bf16.mxu0 %vm567_vm5, %v534_v0  ;;  %v504_v34 = vpop.permute.xlu0 %503 }
  0xab   : > { %v538_v3 = vsel %vm524_vm4, %v521_v43, %v504_v34 }
  0xac   : > { %1619 = vmatmul.mubr.msk.bf16.gmra.mrb[4].mxu1 %vm567_vm5, %v538_v3 }
  0xb1   : > { %1633 = vmatmul.mubr.msk.bf16.gmra.mrb[8].mxu0 %vm567_vm5, %v536_v62 }
  0xb2   : > { %1638 = vmatprep.mubr.msk.bf16.mxu0 %vm567_vm5, %v530_v51 }
  0xb9   : > { %1639 = vmatmul.mubr.msk.bf16.vlgmr.msra.gmra.mrb[0].mxu0 %vm567_vm5, %v532_v57 }
  0xba   : > { %1642 = vmatprep.mubr.msk.bf16.mxu0 %vm567_vm5, %v534_v0  ;;  %v2137_v0 = vld [vmem:[%s2304_s3] sm:$0xff]  }
  0xbb   : > { %1662 = vmatprep.subr.bf16.mxu1 %v2137_v0 }
  0xc1   : > { %1643 = vmatmul.mubr.msk.bf16.gmra.mrb[4].mxu0 %vm567_vm5, %v536_v62  ;;  %v883_v62 = vadd.s32 4, %v2078_v17 }
  0xc2   : > { %1646 = vmatprep.mubr.msk.bf16.mxu0 %vm567_vm5, %v538_v3 }
  0xc3   : > { %vm889_vm8 = vcmp.ge.s32.totalorder %v883_v62, 0  ;;  %vm895_vm9 = vcmp.lt.s32.totalorder %v883_v62, 16 }
  0xc9   : > { %1647 = vmatmul.mubr.msk.bf16.gmra.mrb[8].mxu0 %vm567_vm5, %v540_v8  ;;  %vm2118_vm5 = vmand %vm888_vm13, %vm894_vm14  ;;  %vm969_vm13 = vcmask 1040384   ;;  %vm970_vm14 = vsmask.f32 256 }
  0xca   : > { %vm2211_vm15 = vmand %vm969_vm13, %vm970_vm14 }
 0x177   : > { %v1616_v9 = vpop.f32.mrb[0].mxu1 }
 0x178   : > { %v634_v10 = vpop.f32.mrb[1].mxu1 }
 0x179   : > { %v1617_v11 = vpop.f32.mrb[2].mxu1 }
 0x17a   : > { %v2064_v12 = vpop.f32.mrb[3].mxu1 }
 0x17f   : > { %v2069_v13 = vpop.f32.mrb[4].mxu1 }
 0x180   : > { %v2071_v14 = vpop.f32.mrb[5].mxu1 }
 0x181   : > { %v2074_v15 = vpop.f32.mrb[6].mxu1 }
 0x182   : > { %v2076_v6 = vpop.f32.mrb[7].mxu1 }
 0x18c   : > { %v1640_v22 = vpop.f32.mrb[0].mxu0 }
 0x18d   : > { %v867_v23 = vadd.f32 %v1640_v22, %v2087_v20  ;;  %v800_v24 = vpop.f32.mrb[1].mxu0 }
 0x18e   : > { %v865_v25 = vadd.f32 %v2087_v20, %v800_v24  ;;  %v1641_v26 = vpop.f32.mrb[2].mxu0 }
 0x18f   : > { %v868_v27 = vadd.f32 %v1641_v26, %v2087_v20  ;;  %v803_v28 = vpop.f32.mrb[3].mxu0  ;;  %v905_v32 = vsel %vm898_vm10, %v867_v23, 0.0 }
 0x190   : > { %v866_v31 = vadd.f32 %v2087_v20, %v803_v28  ;;  %v903_v36 = vsel %vm897_vm11, %v865_v25, 0.0 }
 0x191   : > { %v906_v33 = vsel %vm898_vm10, %v868_v27, 0.0  ;;  %vm2164_vm10 = vmand %vm890_vm6, %vm896_vm7 }
 0x192   : > { %v916_v37 = vpack.c.bf16 %v906_v33, %v905_v32  ;;  %v904_v38 = vsel %vm897_vm11, %v866_v31, 0.0  ;;  %vm2172_vm11 = vmand %vm889_vm8, %vm895_vm9 }
 0x193   : > { %v2102_v40 = vpack.c.bf16 %v904_v38, %v903_v36 }
 0x194   : > { %1012 = vrot.lane.b32.xlu0 %v916_v37, %s1844_s8  ;;  %v1644_v41 = vpop.f32.mrb[4].mxu0  ;;  %v929_v42 = vshrl.u32 %v916_v37, 16  ;;  %v932_v44 = vshll.u32 %v916_v37, 16 }
 0x195   : > { %v1688_v45 = vadd.f32 %v1644_v41, %v1616_v9  ;;  %v816_v46 = vpop.f32.mrb[5].mxu0  ;;  %v922_v47 = vshrl.u32 %v2102_v40, 16  ;;  %v925_v56 = vshll.u32 %v2102_v40, 16 }
 0x196   : > { %v1689_v48 = vadd.f32 %v816_v46, %v634_v10  ;;  %v1645_v49 = vpop.f32.mrb[6].mxu0  ;;  %v980_v50 = vrot.slane %v932_v44, 1  ;;  %v931_v51 = vrot.slane %v929_v42, 7 }
 0x197   : > { %v871_v52 = vadd.f32 %v1688_v45, %v2087_v20  ;;  %v1690_v53 = vadd.f32 %v1645_v49, %v1617_v11  ;;  %v819_v4 = vpop.f32.mrb[7].mxu0  ;;  %v924_v55 = vrot.slane %v922_v47, 7 }
 0x198   : > { %v869_v58 = vadd.f32 %v1689_v48, %v2087_v20  ;;  %v1691_v59 = vadd.f32 %v819_v4, %v2064_v12  ;;  %v981_v16 = vor.u32 %v980_v50, %v929_v42  ;;  %v2124_v60 = vor.u32 %v932_v44, %v931_v51 }
 0x199   : > { %v872_v21 = vadd.f32 %v1690_v53, %v2087_v20  ;;  %v2141_v1 = vor.u32 %v925_v56, %v924_v55  ;;  %v909_v3 = vsel %vm2118_vm5, %v871_v52, 0.0  ;;  %v978_v55 = vrot.slane %v925_v56, 1 }
 0x19a   : > { %v870_v43 = vadd.f32 %v1691_v59, %v2087_v20  ;;  %v999_v34 = vsel %vm2109_vm3, %v981_v16, 0  ;;  %v907_v63 = vsel %vm2128_vm1, %v869_v58, 0.0 }
 0x19b   : > { %v910_v5 = vsel %vm2118_vm5, %v872_v21, 0.0  ;;  %1030 = vrot.lane.b32.xlu0 %v999_v34, %s1846_s30  ;;  %v979_v61 = vor.u32 %v978_v55, %v922_v47  ;;  %v973_v47 = vsel %vm2211_vm15, 0, %v2124_v60 }
 0x19c   : > { %v908_v7 = vsel %vm2128_vm1, %v870_v43, 0.0  ;;  %v1648_v8 = vpop.f32.mrb[8].mxu0  ;;  %v918_v9 = vpack.c.bf16 %v910_v5, %v909_v3 }
 0x19d   : > { %v1692_v10 = vadd.f32 %v1648_v8, %v2069_v13  ;;  %v832_v11 = vpop.f32.mrb[9].mxu0  ;;  %v917_v12 = vpack.c.bf16 %v908_v7, %v907_v63  ;;  %v998_v56 = vsel %vm2109_vm3, %v979_v61, 0 }
 0x19e   : > { %v1693_v17 = vadd.f32 %v832_v11, %v2071_v14  ;;  %v1649_v18 = vpop.f32.mrb[10].mxu0  ;;  %v943_v19 = vshrl.u32 %v918_v9, 16  ;;  %v946_v22 = vshll.u32 %v918_v9, 16 }
 0x19f   : > { %v875_v23 = vadd.f32 %v1692_v10, %v2087_v20  ;;  %v1694_v24 = vadd.f32 %v1649_v18, %v2074_v15  ;;  %1016 = vrot.lane.b32.xlu0 %v918_v9, %s1844_s8  ;;  %1014 = vrot.lane.b32.xlu1 %v917_v12, %s1844_s8  ;;  %v835_v25 = vpop.f32.mrb[11].mxu0  ;;  %v936_v13 = vshrl.u32 %v917_v12, 16  ;;  %v939_v26 = vshll.u32 %v917_v12, 16  ;;  %v1801_v12 = vld [vmem:[%s2304_s3 + $0x8] ss:$0 sps:$4 sm:$0xff]  }
 0x1a0   : > { %v873_v14 = vadd.f32 %v1693_v17, %v2087_v20  ;;  %v1695_v28 = vadd.f32 %v835_v25, %v2076_v6  ;;  %v984_v29 = vrot.slane %v946_v22, 1  ;;  %v945_v30 = vrot.slane %v943_v19, 7  ;;  %v1803_v15 = vld [vmem:[%s2304_s3 + $0x20] ss:$0 sps:$4 sm:$0xff]  }
 0x1a1   : > { %v876_v31 = vadd.f32 %v1694_v24, %v2087_v20  ;;  %v982_v32 = vrot.slane %v939_v26, 1  ;;  %v938_v33 = vrot.slane %v936_v13, 7  ;;  %v913_v38 = vsel %vm2164_vm10, %v875_v23, 0.0  ;;  %v1802_v24 = vld [vmem:[%s2304_s3 + $0x18] sm:$0xff]  }
 0x1a2   : > { %v874_v35 = vadd.f32 %v1695_v28, %v2087_v20  ;;  %v985_v36 = vor.u32 %v984_v29, %v943_v19  ;;  %v948_v37 = vor.u32 %v946_v22, %v945_v30  ;;  %v911_v42 = vsel %vm2172_vm11, %v873_v14, 0.0 }
 0x1a3   : > { %v914_v6 = vsel %vm2164_vm10, %v876_v31, 0.0  ;;  %v983_v39 = vor.u32 %v982_v32, %v936_v13  ;;  %v941_v41 = vor.u32 %v939_v26, %v938_v33  ;;  %v1170_v23 = vsel %vm1089_vm12, %v1801_v12, 0 }
 0x1a4   : > { %v912_v44 = vsel %vm2172_vm11, %v874_v35, 0.0  ;;  %v1001_v45 = vsel %vm2109_vm3, %v985_v36, 0  ;;  %v920_v20 = vpack.c.bf16 %v914_v6, %v913_v38  ;;  %v975_v11 = vsel %vm2211_vm15, 0, %v948_v37  ;;  %v1550_v37 = vld [vmem:[%s2305_s4] ss:$0 sm:$0xff] }
 0x1a5   : > { %1034 = vrot.lane.b32.xlu0 %v1001_v45, %s1846_s30  ;;  %v1000_v46 = vsel %vm2109_vm3, %v983_v39, 0  ;;  %v919_v48 = vpack.c.bf16 %v912_v44, %v911_v42  ;;  %v974_v8 = vsel %vm2211_vm15, 0, %v941_v41  ;;  %v972_v14 = vsel %vm2211_vm15, 0, %v2141_v1 }
 0x1a6   : > { %1032 = vrot.lane.b32.xlu1 %v1000_v46, %s1846_s30  ;;  %v957_v49 = vshrl.u32 %v920_v20, 16  ;;  %v960_v52 = vshll.u32 %v920_v20, 16  ;;  %v1249_v1 = vsel %vm1089_vm12, %v1803_v15, 0 }
 0x1a7   : > { %v950_v50 = vshrl.u32 %v919_v48, 16  ;;  %v953_v51 = vshll.u32 %v919_v48, 16 }
 0x1a8   : > { %v959_v2 = vrot.slane %v957_v49, 7  ;;  %v988_v21 = vrot.slane %v960_v52, 1 }
 0x1a9   : > { %1010 = vrot.lane.b32.xlu0 %v2102_v40, %s1844_s8  ;;  %v986_v53 = vrot.slane %v953_v51, 1  ;;  %v952_v4 = vrot.slane %v950_v50, 7 }
 0x1aa   : > { %1018 = vrot.lane.b32.xlu1 %v919_v48, %s1844_s8  ;;  %v2197_v57 = vor.u32 %v960_v52, %v959_v2  ;;  %v989_v62 = vor.u32 %v988_v21, %v957_v49 }
 0x1ab   : > { %v987_v58 = vor.u32 %v986_v53, %v950_v50  ;;  %v955_v59 = vor.u32 %v953_v51, %v952_v4 }
 0x1ac   : > { %v1003_v43 = vsel %vm2109_vm3, %v989_v62, 0  ;;  %v977_v33 = vsel %vm2211_vm15, 0, %v2197_v57 }
 0x1ad   : > { %1020 = vrot.lane.b32.xlu0 %v920_v20, %s1844_s8  ;;  %v1002_v16 = vsel %vm2109_vm3, %v987_v58, 0  ;;  %v976_v25 = vsel %vm2211_vm15, 0, %v955_v59 }
 0x1ae   : > { %1036 = vrot.lane.b32.xlu1 %v1002_v16, %s1846_s30 }
 0x1b2   : > { %1028 = vrot.lane.b32.xlu1 %v998_v56, %s1846_s30 }
 0x1b6   : > { %1038 = vrot.lane.b32.xlu1 %v1003_v43, %s1846_s30 }
 0x206   : > { %v1013_v40 = vpop.permute.xlu0 %1012 }
 0x207   : > { %v1045_v3 = vsel %vm524_vm4, %v973_v47, %v1013_v40 }
 0x20d   : > { %v1031_v5 = vpop.permute.xlu0 %1030 }
 0x20e   : > { %v1062_v54 = vsel %vm1058_vm0, %v1045_v3, %v1031_v5 }
 0x20f   : > { %1654 = vmatprep.mubr.msk.bf16.mxu1 %vm1080_vm2, %v1062_v54 }
 0x211   : > { %v1017_v63 = vpop.permute.xlu0 %1016  ;;  %v1015_v7 = vpop.permute.xlu1 %1014 }
 0x212   : > { %v1048_v10 = vsel %vm524_vm4, %v974_v8, %v1015_v7  ;;  %v1051_v17 = vsel %vm524_vm4, %v975_v11, %v1017_v63 }
 0x217   : > { %v1035_v9 = vpop.permute.xlu0 %1034 }
 0x218   : > { %v1033_v60 = vpop.permute.xlu1 %1032  ;;  %v1066_v19 = vsel %vm1058_vm0, %v1051_v17, %v1035_v9 }
 0x219   : > { %v1064_v18 = vsel %vm1058_vm0, %v1048_v10, %v1033_v60 }
 0x21a   : > { %1655 = vmatmul.mubr.msk.bf16.vlgmr.msra.gmra.mrb[8].mxu1 %vm1080_vm2, %v1064_v18 }
 0x21b   : > { %1663 = vmatpush3.bf16.msra.mxu1 %v2137_v0  ;;  %1658 = vmatprep.mubr.msk.bf16.mxu1 %vm1080_vm2, %v1066_v19  ;;  %v1011_v0 = vpop.permute.xlu0 %1010 }
 0x21c   : > { %v1019_v22 = vpop.permute.xlu1 %1018  ;;  %1733 = vmatprep.subr.msk.bf16.mxu1 %vm1089_vm12, %v1801_v12  ;;  %v1042_v28 = vsel %vm524_vm4, %v972_v14, %v1011_v0 }
 0x21d   : > { %v1054_v13 = vsel %vm524_vm4, %v976_v25, %v1019_v22 }
 0x21f   : > { %1665 = vmatpush3.bf16.msra.mxu1 %v1170_v23  ;;  %v1021_v31 = vpop.permute.xlu0 %1020 }
 0x220   : > { %v1037_v26 = vpop.permute.xlu1 %1036  ;;  %1674 = vmatprep.subr.bf16.mxu1 %v1802_v24  ;;  %v1057_v35 = vsel %vm524_vm4, %v977_v33, %v1021_v31  ;;  %vm1370_vm4 = vcmask 27648  }
 0x221   : > { %v1068_v27 = vsel %vm1058_vm0, %v1054_v13, %v1037_v26 }
 0x222   : > { %1659 = vmatmul.mubr.msk.bf16.gmra.mrb[12].mxu1 %vm1080_vm2, %v1068_v27 }
 0x224   : > { %v1029_v29 = vpop.permute.xlu1 %1028 }
 0x225   : > { %v1060_v30 = vsel %vm1058_vm0, %v1042_v28, %v1029_v29 }
 0x226   : > { %1666 = vmatprep.mubr.msk.bf16.mxu1 %vm1080_vm2, %v1060_v30 }
 0x228   : > { %v1039_v32 = vpop.permute.xlu1 %1038 }
 0x229   : > { %v1070_v36 = vsel %vm1058_vm0, %v1057_v35, %v1039_v32 }
 0x22a   : > { %1667 = vmatmul.mubr.msk.bf16.vlgmr.msra.gmra.mrb[8].mxu1 %vm1080_vm2, %v1062_v54 }
 0x22b   : > { %1675 = vmatpush3.bf16.msra.mxu1 %v1802_v24  ;;  %1670 = vmatprep.mubr.msk.bf16.mxu1 %vm1080_vm2, %v1064_v18 }
 0x22c   : > { %1734 = vmatprep.subr.msk.bf16.mxu1 %vm1089_vm12, %v1803_v15 }
 0x22f   : > { %1677 = vmatpush3.bf16.msra.mxu1 %v1249_v1 }
 0x232   : > { %1671 = vmatmul.mubr.msk.bf16.gmra.mrb[12].mxu1 %vm1080_vm2, %v1066_v19 }
 0x233   : > { %1678 = vmatprep.mubr.msk.bf16.mxu1 %vm1080_vm2, %v1064_v18 }
 0x23a   : > { %1679 = vmatmul.mubr.msk.bf16.vlgmr.msra.gmra.mrb[8].mxu1 %vm1080_vm2, %v1066_v19 }
 0x23b   : > { %1682 = vmatprep.mubr.msk.bf16.mxu1 %vm1080_vm2, %v1068_v27 }
 0x242   : > { %1683 = vmatmul.mubr.msk.bf16.gmra.mrb[12].mxu1 %vm1080_vm2, %v1070_v36 }
 0x30d   : > { %v1680_v38 = vpop.f32.mrb[8].mxu1 }
 0x30e   : > { %v1332_v6 = vadd.f32 %v1680_v38, %v1550_v37  ;;  %v1285_v39 = vpop.f32.mrb[9].mxu1 }
 0x30f   : > { %v1330_v41 = vadd.f32 %v1550_v37, %v1285_v39  ;;  %v1681_v42 = vpop.f32.mrb[10].mxu1 }
 0x310   : > { %v1563_v44 = vpack.c.bf16 %v1332_v6, %v1332_v6  ;;  %v1333_v45 = vadd.f32 %v1681_v42, %v1550_v37  ;;  %v1288_v20 = vpop.f32.mrb[11].mxu1 }
 0x311   : > { %v1561_v46 = vpack.c.bf16 %v1330_v41, %v1330_v41  ;;  %v1331_v48 = vadd.f32 %v1550_v37, %v1288_v20 }
 0x312   : > { %1373 = vst.msk [vmem:[%s262_s27 + $0x8] sm:$0xf] %vm1370_vm4, %v1563_v44  ;;  %v1564_v49 = vpack.c.bf16 %v1333_v45, %v1333_v45 }
 0x313   : > { %1371 = vst.msk [vmem:[%s262_s27] sm:$0xf] %vm1370_vm4, %v1561_v46  ;;  %v1562_v50 = vpack.c.bf16 %v1331_v48, %v1331_v48 }
 0x314   : > { %1374 = vst.msk [vmem:[%s262_s27 + $0xc] sm:$0xf] %vm1370_vm4, %v1564_v49 }
 0x315   : > { %1372 = vst.msk [vmem:[%s262_s27 + $0x4] sm:$0xf] %vm1370_vm4, %v1562_v50  ;;  %v1684_v51 = vpop.f32.mrb[12].mxu1 }
 0x316   : > { %v1336_v2 = vadd.f32 %v1684_v51, %v1550_v37  ;;  %v1301_v52 = vpop.f32.mrb[13].mxu1 }
 0x317   : > { %v1334_v53 = vadd.f32 %v1550_v37, %v1301_v52  ;;  %v1685_v4 = vpop.f32.mrb[14].mxu1 }
 0x318   : > { %v1567_v55 = vpack.c.bf16 %v1336_v2, %v1336_v2  ;;  %v1337_v57 = vadd.f32 %v1685_v4, %v1550_v37  ;;  %v1304_v58 = vpop.f32.mrb[15].mxu1 }
 0x319   : > { %v1565_v59 = vpack.c.bf16 %v1334_v53, %v1334_v53  ;;  %v1335_v16 = vadd.f32 %v1550_v37, %v1304_v58 }
 0x31a   : > { %1377 = vst.msk [vmem:[%s262_s27 + $0x18] sm:$0xf] %vm1370_vm4, %v1567_v55  ;;  %v1568_v61 = vpack.c.bf16 %v1337_v57, %v1337_v57 }
 0x31b   : > { %1375 = vst.msk [vmem:[%s262_s27 + $0x10] sm:$0xf] %vm1370_vm4, %v1565_v59  ;;  %v1566_v21 = vpack.c.bf16 %v1335_v16, %v1335_v16 }
 0x31c   : > { %1378 = vst.msk [vmem:[%s262_s27 + $0x1c] sm:$0xf] %vm1370_vm4, %v1568_v61 }
 0x31d   : > { %1376 = vst.msk [vmem:[%s262_s27 + $0x14] sm:$0xf] %vm1370_vm4, %v1566_v21 }
 0x31e PF: > { %s15_s22 = sadd.s32 1, %s1842_s22   ;;  %s2319_s18 = smov %s1834_s20 }
 0x31f   : > { %p12_p8 = scmp.ge.s32.totalorder %s15_s22, 10   ;;  %s2320_s19 = smov %s1838_s21 }
 0x320   : > { %s2321_s20 = smov %s2324_s23  ;;  %s2322_s21 = smov %s2328_s24 }
 0x321   :  { %14 = sbr.rel (!%p12_p8) target bundleno = 3 (0x3), region = 74 }

</bundles_post_ra>
